<compile_context>
chip_gen: v7x
topology: tpu7x:2x2x1
jax: 0.10.0
libtpu: 0.0.40
codegen_flags: <defaults>
</compile_context>

<pallas_src>
import jax
import jax.numpy as jnp
from jax.experimental import pallas as pl
from jax.experimental.pallas import tpu as pltpu


def _linear_t_kernel(xt_ref, w_ref, b_ref, o_ref):
    """y^T = W @ x^T + b, computed as Din unrolled VPU FMAs (no MXU).

    xt_ref: (Din, L)  f32   x transposed — batch on the lane axis
    w_ref : (Dout, Din) f32 PyTorch (out, in) layout, used directly
    b_ref : (Dout, 1) f32
    o_ref : (Dout, L)       y transposed — batch on the lane axis
    """
    din = xt_ref.shape[0]
    dout, lanes = o_ref.shape

    xt = xt_ref[...].astype(jnp.float32)
    w = w_ref[...].astype(jnp.float32)

    # Start the accumulator from the lane-broadcast bias column.
    acc = jnp.broadcast_to(b_ref[...].astype(jnp.float32), (dout, lanes))

    # Din == 4: fully unrolled.  Each step multiplies a lane-broadcast weight
    # column (Dout, 1) with a sublane-broadcast x^T row (1, L) — pure VALU
    # work, no vmatmul push / MRF pop on the critical path.
    for k in range(din):
        acc = acc + w[:, k:k + 1] * xt[k:k + 1, :]

    o_ref[...] = acc.astype(o_ref.dtype)


def softmax_classifier_forward(x, weight, bias, *, block_lanes=65536):
    """Forward pass of nn.Linear(4, 3): y = x @ W^T + b.

    x      : (B, 4)  f32
    weight : (3, 4)  f32 (PyTorch (out_features, in_features) layout)
    bias   : (3,)    f32
    block_lanes: rows of the batch processed per grid step (multiple of 128).
      Lane-dense VMEM use per step ~ 128 B/row double-buffered, so 65536 rows
      is ~8.5 MiB — safely under every generation's scoped VMEM default.
    """
    B, Din = x.shape
    Dout, Din_w = weight.shape
    assert Din_w == Din, "weight must be (out_features, in_features)"
    assert block_lanes % 128 == 0, "block_lanes must be a multiple of 128"

    xt = x.T                       # (Din, B)  — wrapper layout plumbing
    b2d = bias.reshape(Dout, 1)    # (Dout, 1)

    if B <= block_lanes:
        # Small / moderate batch: single grid-free invocation, whole arrays
        # resident in VMEM (no pipeline prologue/epilogue, no per-step cost).
        yt = pl.pallas_call(
            _linear_t_kernel,
            out_shape=jax.ShapeDtypeStruct((Dout, B), x.dtype),
            in_specs=[
                pl.BlockSpec(memory_space=pltpu.MemorySpace.VMEM),
                pl.BlockSpec(memory_space=pltpu.MemorySpace.VMEM),
                pl.BlockSpec(memory_space=pltpu.MemorySpace.VMEM),
            ],
            out_specs=pl.BlockSpec(memory_space=pltpu.MemorySpace.VMEM),
        )(xt, weight, b2d)
    else:
        # Large batch: tile over the lane (batch) axis only.  Block dims
        # satisfy the (8,128)-or-full-dim rule: leading dims 4 / 3 / 3 are
        # full-extent, trailing dims are multiples of 128.
        grid = (pl.cdiv(B, block_lanes),)
        yt = pl.pallas_call(
            _linear_t_kernel,
            out_shape=jax.ShapeDtypeStruct((Dout, B), x.dtype),
            grid=grid,
            in_specs=[
                pl.BlockSpec((Din, block_lanes), lambda i: (0, i)),
                pl.BlockSpec((Dout, Din), lambda i: (0, 0)),
                pl.BlockSpec((Dout, 1), lambda i: (0, 0)),
            ],
            out_specs=pl.BlockSpec((Dout, block_lanes), lambda i: (0, i)),
            compiler_params=pltpu.CompilerParams(
                # Batch tiles are independent: shard across TensorCores.
                dimension_semantics=("parallel",),
                # Headroom if block_lanes is raised (safe on v5e/v6e/v7x).
                vmem_limit_bytes=32 * 1024 * 1024,
            ),
        )(xt, weight, b2d)

    return yt.T  # (B, Dout)


if __name__ == "__main__":
    key = jax.random.PRNGKey(0)
    k_x, k_w, k_b, k_x2 = jax.random.split(key, 4)

    Din, Dout = 4, 3

    # Deterministic parameter init mimicking nn.Linear's U(-1/sqrt(in), 1/sqrt(in)).
    bound = 1.0 / jnp.sqrt(jnp.float32(Din))
    weight = jax.random.uniform(k_w, (Dout, Din), minval=-bound, maxval=bound,
                                dtype=jnp.float32)
    bias = jax.random.uniform(k_b, (Dout,), minval=-bound, maxval=bound,
                              dtype=jnp.float32)

    # Small batch -> grid-free whole-array path.
    B = 8
    x = jax.random.normal(k_x, (B, Din), dtype=jnp.float32)
    out = jax.block_until_ready(softmax_classifier_forward(x, weight, bias))
    ref = x @ weight.T + bias
    assert out.shape == (B, Dout)
    assert jnp.allclose(out, ref, atol=1e-5, rtol=1e-5)

    # Larger batch with a small block override -> exercises the lane-dense,
    # B-tiled, megacore-parallel path (same kernel body) at test-friendly size.
    B2 = 1024
    x2 = jax.random.normal(k_x2, (B2, Din), dtype=jnp.float32)
    out2 = jax.block_until_ready(
        softmax_classifier_forward(x2, weight, bias, block_lanes=256))
    ref2 = x2 @ weight.T + bias
    assert out2.shape == (B2, Dout)
    assert jnp.allclose(out2, ref2, atol=1e-5, rtol=1e-5)

    print("KERNEL_OK")
</pallas_src>

<mosaic_0001>
module attributes {stable_mosaic.version = 11 : i64} {
  func.func @_linear_t_kernel(%arg0: memref<4x8xf32, #tpu.memory_space<vmem>>, %arg1: memref<3x4xf32, #tpu.memory_space<vmem>>, %arg2: memref<3x1xf32, #tpu.memory_space<vmem>>, %arg3: memref<3x8xf32, #tpu.memory_space<vmem>>) attributes {dimension_semantics = [], scalar_prefetch = 0 : i64, scratch_operands = 0 : i64, tpu.core_type = #tpu.core_type<tc>} {
    %c0 = arith.constant 0 : index
    %c0_0 = arith.constant 0 : index
    %0 = vector.load %arg0[%c0, %c0_0] : memref<4x8xf32, #tpu.memory_space<vmem>>, vector<4x8xf32>
    %c0_1 = arith.constant 0 : index
    %c0_2 = arith.constant 0 : index
    %1 = vector.load %arg1[%c0_1, %c0_2] : memref<3x4xf32, #tpu.memory_space<vmem>>, vector<3x4xf32>
    %c0_3 = arith.constant 0 : index
    %c0_4 = arith.constant 0 : index
    %2 = vector.load %arg2[%c0_3, %c0_4] : memref<3x1xf32, #tpu.memory_space<vmem>>, vector<3x1xf32>
    %3 = vector.shape_cast %2 : vector<3x1xf32> to vector<3x1xf32>
    %4 = vector.broadcast %3 : vector<3x1xf32> to vector<3x8xf32>
    %5 = vector.extract_strided_slice %1 {offsets = [0, 0], sizes = [3, 1], strides = [1, 1]} : vector<3x4xf32> to vector<3x1xf32>
    %6 = vector.extract_strided_slice %0 {offsets = [0, 0], sizes = [1, 8], strides = [1, 1]} : vector<4x8xf32> to vector<1x8xf32>
    %7 = vector.broadcast %5 : vector<3x1xf32> to vector<3x8xf32>
    %8 = vector.broadcast %6 : vector<1x8xf32> to vector<3x8xf32>
    %9 = arith.mulf %7, %8 : vector<3x8xf32>
    %10 = arith.addf %4, %9 : vector<3x8xf32>
    %11 = vector.extract_strided_slice %1 {offsets = [0, 1], sizes = [3, 1], strides = [1, 1]} : vector<3x4xf32> to vector<3x1xf32>
    %12 = vector.extract_strided_slice %0 {offsets = [1, 0], sizes = [1, 8], strides = [1, 1]} : vector<4x8xf32> to vector<1x8xf32>
    %13 = vector.broadcast %11 : vector<3x1xf32> to vector<3x8xf32>
    %14 = vector.broadcast %12 : vector<1x8xf32> to vector<3x8xf32>
    %15 = arith.mulf %13, %14 : vector<3x8xf32>
    %16 = arith.addf %10, %15 : vector<3x8xf32>
    %17 = vector.extract_strided_slice %1 {offsets = [0, 2], sizes = [3, 1], strides = [1, 1]} : vector<3x4xf32> to vector<3x1xf32>
    %18 = vector.extract_strided_slice %0 {offsets = [2, 0], sizes = [1, 8], strides = [1, 1]} : vector<4x8xf32> to vector<1x8xf32>
    %19 = vector.broadcast %17 : vector<3x1xf32> to vector<3x8xf32>
    %20 = vector.broadcast %18 : vector<1x8xf32> to vector<3x8xf32>
    %21 = arith.mulf %19, %20 : vector<3x8xf32>
    %22 = arith.addf %16, %21 : vector<3x8xf32>
    %23 = vector.extract_strided_slice %1 {offsets = [0, 3], sizes = [3, 1], strides = [1, 1]} : vector<3x4xf32> to vector<3x1xf32>
    %24 = vector.extract_strided_slice %0 {offsets = [3, 0], sizes = [1, 8], strides = [1, 1]} : vector<4x8xf32> to vector<1x8xf32>
    %25 = vector.broadcast %23 : vector<3x1xf32> to vector<3x8xf32>
    %26 = vector.broadcast %24 : vector<1x8xf32> to vector<3x8xf32>
    %27 = arith.mulf %25, %26 : vector<3x8xf32>
    %28 = arith.addf %22, %27 : vector<3x8xf32>
    %c0_5 = arith.constant 0 : index
    %c0_6 = arith.constant 0 : index
    %29 = vector.load %arg3[%c0_5, %c0_6] : memref<3x8xf32, #tpu.memory_space<vmem>>, vector<3x8xf32>
    tpu.vector_store %arg3[%c0_5, %c0_6], %28 {strides = array<i32>} : memref<3x8xf32, #tpu.memory_space<vmem>>, vector<3x8xf32>,
    return
  }
}

</mosaic_0001>

<bundles_post_ra>
// kernel: tpu_custom_call.1
= control target key start
LH: loop header
LB: loop body
LE: loop exit
PB: predicated region body
PF: predicated region fallthrough
CT: control target
= control target key end

     0   :  { %v113_v1 = vmov 0   ;;  %v114_v2 = vmov 1   ;;  %s159_s0 = inlined_call_operand.vmem [shape: f32[4,8], index: 0, kind: input, shape index: {}]   ;;  %s160_s1 = inlined_call_operand.vmem [shape: f32[3,4], index: 1, kind: input, shape index: {}]   ;;  %s161_s2 = inlined_call_operand.vmem [shape: f32[3,1], index: 2, kind: input, shape index: {}]   ;;  %s162_s3 = inlined_call_operand.hbm [shape: f32[3,8], index: 3, kind: output, shape index: {}]  }
   0x1   :  { %v16_v0 = vld [vmem:[%s160_s1] sm:$0x7]  ;;  %85 = vset.pattern.permute.xlu0 %v113_v1  ;;  %86 = vset.pattern.permute.xlu1 %v114_v2 }
   0x2   :  { %8 = vsyncpa [#allocation3], 0  ;;  %25 = vperm.xlu0 %85, %v16_v0   ;;  %35 = vperm.xlu1 %86, %v16_v0   ;;  %v17_v3 = vld [vmem:[%s161_s2] sm:$0x7]  ;;  %v115_v4 = vmov 2   ;;  %v116_v5 = vmov 3   ;;  %v28_v6 = vlaneseq }
   0x3   :  { %v15_v9 = vld [vmem:[%s159_s0] sm:$0xf]  ;;  %s117_s2 = smov [#allocation2]   ;;  %vm64_vm0 = vcmask 59392  }
   0x4   :  { %v29_v7 = vshrl.u32 %v28_v6, 7  ;;  %s72_s0 = sshll.u32 %s117_s2, 4  ;;  %s73_s0 = int_to_ptr.vmem [resolvable:$true] %s72_s0 }
   0x5   :  { %s89_s17 = scalar_lea.vmem %s73_s0, 64  ;;  %p94_p1 = scmp.lt.s32.totalorder %s73_s0, %s73_s0 }
   0x6   :  { %20 = vperm.xlu0 %85, %v17_v3   ;;  %87 = vset.pattern.permute.xlu1 %v115_v4  ;;  %v30_v8 = vsub.s32 0, %v29_v7  ;;  %v40_v10 = vsub.s32 1, %v29_v7  ;;  %v50_v11 = vsub.s32 2, %v29_v7  ;;  %v60_v17 = vsub.s32 3, %v29_v7  ;;  %p90_p0 = scmp.ne.s32.totalorder %s73_s0, %s89_s17  ;;  %p95_p2 = scmp.lt.s32.totalorder %s89_s17, %s89_s17 }
   0x7   :  { %45 = vperm.xlu1 %87, %v16_v0  }
   0x8   :  { %v31_v12 = vrot.slane %v15_v9, %v30_v8  ;;  %v41_v15 = vrot.slane %v15_v9, %v40_v10  ;;  %v51_v16 = vrot.slane %v15_v9, %v50_v11  ;;  %v61_v24 = vrot.slane %v15_v9, %v60_v17  ;;  %p96_p3 = por %p95_p2, %p94_p1 }
   0xa   :  { %88 = vset.pattern.permute.xlu0 %v116_v5  ;;  %p97_p4 = pnand %p96_p3, %p90_p0 }
   0xb   :  { %55 = vperm.xlu0 %88, %v16_v0  }
  0x81   :  { %v26_v13 = vpop.permute.xlu0 %25  ;;  %v36_v14 = vpop.permute.xlu1 %35 }
  0x82   :  { %v32_v18 = vmul.f32 %v31_v12, %v26_v13  ;;  %v42_v20 = vmul.f32 %v41_v15, %v36_v14 }
  0x85   :  { %v21_v19 = vpop.permute.xlu0 %20 }
  0x86   :  { %v33_v21 = vadd.f32 %v32_v18, %v21_v19  ;;  %v46_v22 = vpop.permute.xlu1 %45 }
  0x87   :  { %v52_v23 = vmul.f32 %v51_v16, %v46_v22 }
  0x88   :  { %v43_v25 = vadd.f32 %v42_v20, %v33_v21 }
  0x8a   :  { %v53_v26 = vadd.f32 %v52_v23, %v43_v25  ;;  %v56_v27 = vpop.permute.xlu0 %55 }
  0x8b   :  { %v62_v28 = vmul.f32 %v61_v24, %v56_v27 }
  0x8d   :  { %v63_v29 = vadd.f32 %v62_v28, %v53_v26 }
  0x8f   :  { %65 = vst.msk [vmem:[#allocation2] sm:$0x7] %vm64_vm0, %v63_v29 }
  0x90   :  { %100 = shalt.err (!%p97_p4)
}
  0x91   :  { %s101_s20 = scalar_lea.hbm %s162_s3, 64 }
  0x92   :  { %p102_p5 = scmp.ne.s32.totalorder %s162_s3, %s101_s20  ;;  %p105_p6 = scmp.lt.u32.totalorder %s101_s20, %s162_s3 }
  0x94   :  { %p107_p7 = pnand %p105_p6, %p102_p5 }
  0x96   :  { %110 = shalt.err (!%p107_p7)
}
  0x97   :  { %75 = dma.vmem_to_hbm [thread:$0]  %s73_s0, 64, %s162_s3, [#allocation3]  }
  0x98   :  { %111 = dma.done.wait [#allocation3], 64  }
  0x99   :  { %112 = vsyncadd [#allocation3], 4294967232 }
  0x9a   :  { %79 = vsyncpa [#allocation3], 1 }

</bundles_post_ra>
